<compile_context>
chip_gen: v7x
topology: tpu7x:2x2x1
jax: 0.10.0
libtpu: 0.0.40
codegen_flags: <defaults>
</compile_context>

<pallas_src>
import jax
import jax.numpy as jnp
from jax.experimental import pallas as pl
from jax.experimental.pallas import tpu as pltpu


def _identity_kernel(v_ref, o_ref):
    # StaticScheduler performs no arithmetic: parity path is a pure copy of the
    # stored constant through VMEM, one lane-dense tile at a time.
    o_ref[...] = v_ref[...]


def _build_parity_call(value: jax.Array):
    """Tiled identity pallas_call producing a fresh buffer equal to `value`."""
    shape, dtype = value.shape, value.dtype

    # Preferred path: 2-D, (8,128)-aligned value -> row-tiled copy so even a
    # large `value` never needs a whole-array VMEM block (v7x has only 64 MiB
    # physical VMEM).
    if len(shape) == 2 and shape[0] % 8 == 0 and shape[1] % 128 == 0:
        tm = min(shape[0], 512)
        while shape[0] % tm:
            tm //= 2  # terminates at >= 8 since shape[0] % 8 == 0
        grid = (shape[0] // tm,)
        return pl.pallas_call(
            _identity_kernel,
            out_shape=jax.ShapeDtypeStruct(shape, dtype),
            grid=grid,
            in_specs=[pl.BlockSpec((tm, shape[1]), lambda i: (i, 0))],
            out_specs=pl.BlockSpec((tm, shape[1]), lambda i: (i, 0)),
            compiler_params=pltpu.CompilerParams(
                dimension_semantics=("parallel",)),
        )

    # Fallback for small / oddly shaped values: whole-array block (default
    # specs).  Only used when the value is tiny, so VMEM footprint is trivial.
    # TODO(synk): add generic tiling for large non-(8,128)-aligned values.
    return pl.pallas_call(
        _identity_kernel,
        out_shape=jax.ShapeDtypeStruct(shape, dtype),
    )


def make_static_scheduler(value, *, use_pallas: bool = False):
    """Builds StaticScheduler.forward.  All runtime args are ignored by design.

    use_pallas=False (default, fastest): return the stored device constant
      directly -- no kernel, no HBM traffic, constant-folds under an enclosing
      jax.jit.
    use_pallas=True: route through a tiled identity pallas_call (framework
      parity path; produces a fresh buffer equal to `value`).
    """
    # Put the constant on device once; do not re-upload / re-bake per call.
    value = jax.device_put(jnp.asarray(value))

    if not use_pallas:
        def forward(tensor, labels, batch_num, epoch, cum_batch_num,
                    ensemble_channel):
            # StaticScheduler: same value no matter what.
            return value
        return forward

    parity_fn = _build_parity_call(value)

    def forward(tensor, labels, batch_num, epoch, cum_batch_num,
                ensemble_channel):
        # All runtime inputs are ignored (matches the PyTorch reference).
        return parity_fn(value)

    return forward


if __name__ == "__main__":
    key = jax.random.PRNGKey(0)
    k_val, k_tensor, k_labels = jax.random.split(key, 3)

    # Stored "parameter" of the module.  Lane-dense layout (last dim = 128).
    value = jax.random.normal(k_val, (8, 128), dtype=jnp.float32)

    # Runtime inputs (ignored by StaticScheduler; present for signature parity).
    tensor = jax.random.normal(k_tensor, (2, 8, 32), dtype=jnp.float32)
    labels = jax.random.randint(k_labels, (2, 8), 0, 32, dtype=jnp.int32)
    batch_num, epoch, cum_batch_num, ensemble_channel = 3, 1, 17, 0

    # 1) Recommended fast path: no kernel at all.
    fast = make_static_scheduler(value, use_pallas=False)
    out_fast = jax.block_until_ready(
        fast(tensor, labels, batch_num, epoch, cum_batch_num, ensemble_channel))

    # 2) Pallas parity path: tiled identity copy kernel.
    par = make_static_scheduler(value, use_pallas=True)
    out_pallas = jax.block_until_ready(
        par(tensor, labels, batch_num, epoch, cum_batch_num, ensemble_channel))

    assert out_fast.shape == value.shape and out_fast.dtype == value.dtype
    assert out_pallas.shape == value.shape and out_pallas.dtype == value.dtype
    assert bool(jnp.array_equal(out_fast, value))
    assert bool(jnp.array_equal(out_pallas, value))
    print("KERNEL_OK")
</pallas_src>

<mosaic_0001>
module attributes {stable_mosaic.version = 11 : i64} {
  func.func @_identity_kernel(%arg0: i32, %arg1: memref<8x128xf32, #tpu.memory_space<vmem>>, %arg2: memref<8x128xf32, #tpu.memory_space<vmem>>) attributes {dimension_semantics = [#tpu.dimension_semantics<parallel>], iteration_bounds = array<i64: 1>, scalar_prefetch = 0 : i64, scratch_operands = 0 : i64, tpu.core_type = #tpu.core_type<tc>, window_params = [{transform_indices = @transform_0, window_bounds = array<i64: 8, 128>}, {transform_indices = @transform_1, window_bounds = array<i64: 8, 128>}]} {
    %c0 = arith.constant 0 : index
    %c0_0 = arith.constant 0 : index
    %0 = vector.load %arg1[%c0, %c0_0] : memref<8x128xf32, #tpu.memory_space<vmem>>, vector<8x128xf32>
    %c0_1 = arith.constant 0 : index
    %c0_2 = arith.constant 0 : index
    %1 = vector.load %arg2[%c0_1, %c0_2] : memref<8x128xf32, #tpu.memory_space<vmem>>, vector<8x128xf32>
    tpu.vector_store %arg2[%c0_1, %c0_2], %0 {strides = array<i32>} : memref<8x128xf32, #tpu.memory_space<vmem>>, vector<8x128xf32>,
    return
  }
  func.func @transform_0(%arg0: i32) -> (i32, i32) {
    %c0_i32 = arith.constant 0 : i32
    %c0_i32_0 = arith.constant 0 : i32
    return %arg0, %c0_i32 : i32, i32
  }
  func.func @transform_1(%arg0: i32) -> (i32, i32) {
    %c0_i32 = arith.constant 0 : i32
    %c0_i32_0 = arith.constant 0 : i32
    return %arg0, %c0_i32 : i32, i32
  }
}

</mosaic_0001>

<bundles_post_ra>
// kernel: tpu_custom_call.1
= control target key start
LH: loop header
LB: loop body
LE: loop exit
PB: predicated region body
PF: predicated region fallthrough
CT: control target
= control target key end

     0   :  { %6 = vsyncpa [#allocation3], 0  ;;  %s124_s0 = inlined_call_operand.hbm [shape: f32[8,128], index: 0, kind: input, shape index: {}]   ;;  %s125_s1 = inlined_call_operand.hbm [shape: f32[8,128], index: 1, kind: output, shape index: {}]  }
   0x1   :  { %7 = vsyncpa [#allocation4], 0  ;;  %s88_s6 = smov [#allocation2]   ;;  %s40_s10 = scalar_lea.hbm %s124_s0, 128 }
   0x2   :  { %s14_s7 = sshll.u32 %s88_s6, 4  ;;  %p41_p0 = scmp.ne.s32.totalorder %s124_s0, %s40_s10  ;;  %s15_s7 = int_to_ptr.vmem [resolvable:$true] %s14_s7 }
   0x3   :  { %p44_p1 = scmp.lt.u32.totalorder %s40_s10, %s124_s0 }
   0x5   :  { %p46_p2 = pnand %p44_p1, %p41_p0 }
   0x7   :  { %49 = shalt.err (!%p46_p2)
}
   0x8   :  { %s50_s15 = scalar_lea.vmem %s15_s7, 128  ;;  %p55_p4 = scmp.lt.s32.totalorder %s15_s7, %s15_s7 }
   0x9   :  { %p51_p3 = scmp.ne.s32.totalorder %s15_s7, %s50_s15  ;;  %p56_p5 = scmp.lt.s32.totalorder %s50_s15, %s50_s15 }
   0xb   :  { %p57_p6 = por %p56_p5, %p55_p4 }
   0xd   :  { %p58_p7 = pnand %p57_p6, %p51_p3 }
   0xf   :  { %61 = shalt.err (!%p58_p7)
}
  0x10   :  { %17 = dma.hbm_to_vmem [thread:$0]  %s124_s0, 128, %s15_s7, [#allocation3]  }
  0x11   :  { %84 = dma.done.wait [#allocation3], 128  }
  0x12   :  { %85 = vsyncadd [#allocation3], 4294967168  ;;  %s89_s18 = smov [#allocation5]   ;;  %v21_v0 = vld [vmem:[#allocation2] sm:$0xff] }
  0x13   :  { %s29_s19 = sshll.u32 %s89_s18, 4  ;;  %22 = vst [vmem:[#allocation5] sm:$0xff] %v21_v0  ;;  %s30_s19 = int_to_ptr.vmem [resolvable:$true] %s29_s19 }
  0x14   :  { %s62_s20 = scalar_lea.vmem %s30_s19, 128  ;;  %p67_p9 = scmp.lt.s32.totalorder %s30_s19, %s30_s19 }
  0x15   :  { %p63_p8 = scmp.ne.s32.totalorder %s30_s19, %s62_s20  ;;  %p68_p10 = scmp.lt.s32.totalorder %s62_s20, %s62_s20 }
  0x17   :  { %p69_p11 = por %p68_p10, %p67_p9 }
  0x19   :  { %p70_p12 = pnand %p69_p11, %p63_p8 }
  0x1b   :  { %73 = shalt.err (!%p70_p12)
}
  0x1c   :  { %s74_s23 = scalar_lea.hbm %s125_s1, 128 }
  0x1d   :  { %p75_p13 = scmp.ne.s32.totalorder %s125_s1, %s74_s23  ;;  %p78_p0 = scmp.lt.u32.totalorder %s74_s23, %s125_s1 }
  0x1f   :  { %p80_p1 = pnand %p78_p0, %p75_p13 }
  0x21   :  { %83 = shalt.err (!%p80_p1)
}
  0x22   :  { %32 = dma.vmem_to_hbm [thread:$0]  %s30_s19, 128, %s125_s1, [#allocation4]  }
  0x23   :  { %86 = dma.done.wait [#allocation4], 128  }
  0x24   :  { %87 = vsyncadd [#allocation4], 4294967168 }
  0x25   :  { %36 = vsyncpa [#allocation3], 1 }
  0x26   :  { %37 = vsyncpa [#allocation4], 1 }

</bundles_post_ra>
